<compile_context>
chip_gen: v6e
topology: v6e:2x2x1
jax: 0.10.0
libtpu: 0.0.40
codegen_flags: <defaults>
</compile_context>

<pallas_src>
import functools

import jax
import jax.numpy as jnp
from jax import lax
from jax.experimental import pallas as pl
from jax.experimental.pallas import tpu as pltpu

NEG_FILL = -1e30  # fill for padded logit lanes (>= 26); exp() underflows to 0.


def mary_lstm_kernel(x_proj_ref,     # (T, B, 4H)  x@W_ih + (b_ih + b_hh), hoisted
                     w_hh_ref,       # (H, 4H)     fused recurrent weight
                     static_pre_ref,  # (B, H)     guessed@wc_g + len@wc_l + b_c
                     wc_h_ref,       # (H, H)      combine weight, h block
                     wo_ref,         # (H, 128)    output weight, zero-padded lanes >= 26
                     bo_ref,         # (1, 128)    output bias, NEG_FILL in lanes >= 26
                     out_ref):       # (B, 128)    softmax probabilities (padded lanes ~ 0)
    T = x_proj_ref.shape[0]
    B = out_ref.shape[0]
    H = w_hh_ref.shape[0]

    h0 = jnp.zeros((B, H), jnp.float32)
    c0 = jnp.zeros((B, H), jnp.float32)

    def step(t, carry):
        h, c = carry
        # Single lane-dense (B, H) x (H, 4H) matmul on the serial h-chain; the
        # x_proj_ref[t] load is h-independent and can be hoisted off-chain by
        # the scheduler.  Gate order matches PyTorch LSTM: i, f, g, o.
        gates = jnp.dot(h, w_hh_ref[...],
                        preferred_element_type=jnp.float32) + x_proj_ref[t]
        i_g = jax.nn.sigmoid(gates[:, 0 * H:1 * H])
        f_g = jax.nn.sigmoid(gates[:, 1 * H:2 * H])
        g_g = jnp.tanh(gates[:, 2 * H:3 * H])
        o_g = jax.nn.sigmoid(gates[:, 3 * H:4 * H])
        c_new = f_g * c + i_g * g_g
        h_new = o_g * jnp.tanh(c_new)
        return (h_new, c_new)

    h_final, _ = lax.fori_loop(0, T, step, (h0, c0), unroll=True)

    # combine(cat([h, guessed, len])): only the h-dependent matmul stays in the
    # kernel; the rest was hoisted into static_pre.  ReLU; dropout = identity.
    hidden = jnp.maximum(
        jnp.dot(h_final, wc_h_ref[...], preferred_element_type=jnp.float32)
        + static_pre_ref[...],
        0.0)

    # Lane-dense (B, 128) logits; padded lanes carry NEG_FILL from the bias.
    logits = jnp.dot(hidden, wo_ref[...],
                     preferred_element_type=jnp.float32) + bo_ref[...]

    # Numerically-stable softmax over the full 128 lanes (padded lanes -> 0);
    # exact reciprocal keeps the 1e-5 sum-to-1 / reference tolerance.
    m = jnp.max(logits, axis=-1, keepdims=True)
    e = jnp.exp(logits - m)
    s = jnp.sum(e, axis=-1, keepdims=True)
    out_ref[...] = e * pl.reciprocal(s)


def init_params(key, hidden_dim=32, embedding_dim=8):
    """Deterministic synthetic parameters matching the PyTorch module's shapes."""
    H, E = hidden_dim, embedding_dim
    ks = jax.random.split(key, 9)
    s = 0.1
    params = dict(
        emb_table=jax.random.normal(ks[0], (27, E), jnp.float32) * s,
        # PyTorch stores weight_ih_l0 as (4H, E); we keep the transposed (E, 4H) form.
        w_ih=jax.random.normal(ks[1], (E, 4 * H), jnp.float32) * s,
        w_hh=jax.random.normal(ks[2], (H, 4 * H), jnp.float32) * s,
        b_ih=jax.random.normal(ks[3], (1, 4 * H), jnp.float32) * s,
        b_hh=jax.random.normal(ks[4], (1, 4 * H), jnp.float32) * s,
        # combine: Linear(H + 26 + 5, H); stored transposed as (H+31, H).
        w_c=jax.random.normal(ks[5], (H + 31, H), jnp.float32) * s,
        b_c=jax.random.normal(ks[6], (1, H), jnp.float32) * s,
        # output: Linear(H, 26); stored transposed as (H, 26).
        w_o=jax.random.normal(ks[7], (H, 26), jnp.float32) * s,
        b_o=jax.random.normal(ks[8], (1, 26), jnp.float32) * s,
    )
    return params


@functools.partial(jax.jit, static_argnames=("hidden_dim",))
def mary_lstm_forward(params, word_state, guessed_letters, word_length, hidden_dim=32):
    """word_state: (B, T) int32 in [0, 27); guessed_letters: (B, 26) f32;
    word_length: (B,) int32 in [1, 32)."""
    B, T = word_state.shape
    H = hidden_dim

    # ---- wrapper glue (plain JAX) --------------------------------------
    # Hoisted input projection: per-letter gate table (27, 4H), gathered along
    # the sequence, bias folded in.  Kept as one (T, B, 4H) tensor (i,f,g,o).
    gate_table = (params["emb_table"] @ params["w_ih"]
                  + (params["b_ih"] + params["b_hh"]))              # (27, 4H)
    x_proj = gate_table[word_state]                                 # (B, T, 4H)
    x_proj = jnp.transpose(x_proj, (1, 0, 2)).astype(jnp.float32)   # (T, B, 4H)

    # 5-bit length encoding (MSB first, like format(i, '05b')).
    shifts = jnp.arange(4, -1, -1, dtype=jnp.int32)
    len_bits = ((word_length[:, None] >> shifts[None, :]) & 1).astype(jnp.float32)

    # Recurrence-independent half of the combine layer, hoisted out of the
    # kernel (removes K=26 and K=5 padded matmuls + 5 kernel inputs).
    wc = params["w_c"]
    wc_h = wc[:H]                                                    # (H, H)
    static_pre = (guessed_letters.astype(jnp.float32) @ wc[H:H + 26]
                  + len_bits @ wc[H + 26:]
                  + params["b_c"])                                   # (B, H)

    # Lane-dense output path: pad to 128 lanes; padded bias lanes get NEG_FILL
    # so the 128-lane softmax normalization ignores them.
    wo_pad = jnp.zeros((H, 128), jnp.float32).at[:, :26].set(params["w_o"])
    bo_pad = jnp.full((1, 128), NEG_FILL, jnp.float32).at[:, :26].set(params["b_o"])

    # ---- Pallas kernel ---------------------------------------------------
    vmem = pl.BlockSpec(memory_space=pltpu.MemorySpace.VMEM)
    out_padded = pl.pallas_call(
        mary_lstm_kernel,
        out_shape=jax.ShapeDtypeStruct((B, 128), jnp.float32),
        in_specs=[vmem] * 6,
        out_specs=vmem,
    )(x_proj, params["w_hh"], static_pre, wc_h, wo_pad, bo_pad)
    return out_padded[:, :26]


def reference_forward(params, word_state, guessed_letters, word_length, hidden_dim=32):
    """Pure-JAX reference mirroring the PyTorch forward (eval mode)."""
    H = hidden_dim
    emb = params["emb_table"][word_state]  # (B, T, E)
    B, T, E = emb.shape

    def cell(carry, x_t):
        h, c = carry
        gates = x_t @ params["w_ih"] + h @ params["w_hh"] + (params["b_ih"] + params["b_hh"])[0]
        i = jax.nn.sigmoid(gates[:, 0 * H:1 * H])
        f = jax.nn.sigmoid(gates[:, 1 * H:2 * H])
        g = jnp.tanh(gates[:, 2 * H:3 * H])
        o = jax.nn.sigmoid(gates[:, 3 * H:4 * H])
        c = f * c + i * g
        h = o * jnp.tanh(c)
        return (h, c), None

    h0 = jnp.zeros((B, H), jnp.float32)
    (h_final, _), _ = lax.scan(cell, (h0, h0), jnp.transpose(emb, (1, 0, 2)))
    shifts = jnp.arange(4, -1, -1, dtype=jnp.int32)
    len_bits = ((word_length[:, None] >> shifts[None, :]) & 1).astype(jnp.float32)
    combined = jnp.concatenate([h_final, guessed_letters, len_bits], axis=1)
    hidden = jnp.maximum(combined @ params["w_c"] + params["b_c"], 0.0)
    logits = hidden @ params["w_o"] + params["b_o"]
    return jax.nn.softmax(logits, axis=-1)


if __name__ == "__main__":
    key = jax.random.PRNGKey(0)
    k_param, k_ws, k_gl, k_len = jax.random.split(key, 4)

    B, T = 2, 8       # batch, sequence length
    H, E = 32, 8      # hidden_dim, embedding_dim (small-shape variants of the module)

    params = init_params(k_param, hidden_dim=H, embedding_dim=E)

    word_state = jax.random.randint(k_ws, (B, T), 0, 27, dtype=jnp.int32)
    guessed_letters = jax.random.bernoulli(k_gl, 0.3, (B, 26)).astype(jnp.float32)
    word_length = jax.random.randint(k_len, (B,), 1, 32, dtype=jnp.int32)

    out = mary_lstm_forward(params, word_state, guessed_letters, word_length, hidden_dim=H)
    out = jax.block_until_ready(out)

    ref = reference_forward(params, word_state, guessed_letters, word_length, hidden_dim=H)
    assert out.shape == (B, 26)
    assert jnp.allclose(jnp.sum(out, axis=-1), 1.0, atol=1e-5)
    assert jnp.allclose(out, ref, atol=1e-5, rtol=1e-5)

    print("KERNEL_OK")
</pallas_src>

<mosaic_0001>
module attributes {stable_mosaic.version = 11 : i64} {
  func.func @mary_lstm_kernel(%arg0: memref<8x2x128xf32, #tpu.memory_space<vmem>>, %arg1: memref<32x128xf32, #tpu.memory_space<vmem>>, %arg2: memref<2x32xf32, #tpu.memory_space<vmem>>, %arg3: memref<32x32xf32, #tpu.memory_space<vmem>>, %arg4: memref<32x128xf32, #tpu.memory_space<vmem>>, %arg5: memref<1x128xf32, #tpu.memory_space<vmem>>, %arg6: memref<2x128xf32, #tpu.memory_space<vmem>>) attributes {dimension_semantics = [], scalar_prefetch = 0 : i64, scratch_operands = 0 : i64, tpu.core_type = #tpu.core_type<tc>} {
    %cst = arith.constant 0.000000e+00 : f32
    %0 = vector.broadcast %cst : f32 to vector<2x32xf32>
    %cst_0 = arith.constant 0.000000e+00 : f32
    %1 = vector.broadcast %cst_0 : f32 to vector<2x32xf32>
    %c0_i32 = arith.constant 0 : i32
    %c0 = arith.constant 0 : index
    %c0_1 = arith.constant 0 : index
    %2 = vector.load %arg1[%c0, %c0_1] : memref<32x128xf32, #tpu.memory_space<vmem>>, vector<32x128xf32>
    %cst_2 = arith.constant dense<0.000000e+00> : vector<2x128xf32>
    %3 = tpu.matmul %0, %2, %cst_2 {dimension_numbers = #tpu.dot_dimension_numbers<[1], [0], [0], [1], [0, 0, 1, 1], [], []>} : vector<2x32xf32>, vector<32x128xf32>, vector<2x128xf32> -> vector<2x128xf32>
    %4 = arith.index_cast %c0_i32 : i32 to index
    %c0_3 = arith.constant 0 : index
    %c0_4 = arith.constant 0 : index
    %5 = vector.load %arg0[%4, %c0_3, %c0_4] : memref<8x2x128xf32, #tpu.memory_space<vmem>>, vector<1x2x128xf32>
    %6 = vector.shape_cast %5 : vector<1x2x128xf32> to vector<2x128xf32>
    %7 = arith.addf %3, %6 : vector<2x128xf32>
    %8 = vector.extract_strided_slice %7 {offsets = [0, 0], sizes = [2, 32], strides = [1, 1]} : vector<2x128xf32> to vector<2x32xf32>
    %9 = arith.negf %8 : vector<2x32xf32>
    %10 = math.exp %9 : vector<2x32xf32>
    %cst_5 = arith.constant 1.000000e+00 : f32
    %11 = vector.broadcast %cst_5 : f32 to vector<2x32xf32>
    %12 = arith.addf %11, %10 : vector<2x32xf32>
    %13 = arith.divf %11, %12 : vector<2x32xf32>
    %14 = vector.extract_strided_slice %7 {offsets = [0, 32], sizes = [2, 32], strides = [1, 1]} : vector<2x128xf32> to vector<2x32xf32>
    %15 = arith.negf %14 : vector<2x32xf32>
    %16 = math.exp %15 : vector<2x32xf32>
    %cst_6 = arith.constant 1.000000e+00 : f32
    %17 = vector.broadcast %cst_6 : f32 to vector<2x32xf32>
    %18 = arith.addf %17, %16 : vector<2x32xf32>
    %19 = arith.divf %17, %18 : vector<2x32xf32>
    %20 = vector.extract_strided_slice %7 {offsets = [0, 64], sizes = [2, 32], strides = [1, 1]} : vector<2x128xf32> to vector<2x32xf32>
    %21 = math.tanh %20 : vector<2x32xf32>
    %22 = vector.extract_strided_slice %7 {offsets = [0, 96], sizes = [2, 32], strides = [1, 1]} : vector<2x128xf32> to vector<2x32xf32>
    %23 = arith.negf %22 : vector<2x32xf32>
    %24 = math.exp %23 : vector<2x32xf32>
    %cst_7 = arith.constant 1.000000e+00 : f32
    %25 = vector.broadcast %cst_7 : f32 to vector<2x32xf32>
    %26 = arith.addf %25, %24 : vector<2x32xf32>
    %27 = arith.divf %25, %26 : vector<2x32xf32>
    %28 = arith.mulf %19, %1 : vector<2x32xf32>
    %29 = arith.mulf %13, %21 : vector<2x32xf32>
    %30 = arith.addf %28, %29 : vector<2x32xf32>
    %31 = math.tanh %30 : vector<2x32xf32>
    %32 = arith.mulf %27, %31 : vector<2x32xf32>
    %c1_i32 = arith.constant 1 : i32
    %c0_8 = arith.constant 0 : index
    %c0_9 = arith.constant 0 : index
    %33 = vector.load %arg1[%c0_8, %c0_9] : memref<32x128xf32, #tpu.memory_space<vmem>>, vector<32x128xf32>
    %cst_10 = arith.constant dense<0.000000e+00> : vector<2x128xf32>
    %34 = tpu.matmul %32, %33, %cst_10 {dimension_numbers = #tpu.dot_dimension_numbers<[1], [0], [0], [1], [0, 0, 1, 1], [], []>} : vector<2x32xf32>, vector<32x128xf32>, vector<2x128xf32> -> vector<2x128xf32>
    %35 = arith.index_cast %c1_i32 : i32 to index
    %c0_11 = arith.constant 0 : index
    %c0_12 = arith.constant 0 : index
    %36 = vector.load %arg0[%35, %c0_11, %c0_12] : memref<8x2x128xf32, #tpu.memory_space<vmem>>, vector<1x2x128xf32>
    %37 = vector.shape_cast %36 : vector<1x2x128xf32> to vector<2x128xf32>
    %38 = arith.addf %34, %37 : vector<2x128xf32>
    %39 = vector.extract_strided_slice %38 {offsets = [0, 0], sizes = [2, 32], strides = [1, 1]} : vector<2x128xf32> to vector<2x32xf32>
    %40 = arith.negf %39 : vector<2x32xf32>
    %41 = math.exp %40 : vector<2x32xf32>
    %cst_13 = arith.constant 1.000000e+00 : f32
    %42 = vector.broadcast %cst_13 : f32 to vector<2x32xf32>
    %43 = arith.addf %42, %41 : vector<2x32xf32>
    %44 = arith.divf %42, %43 : vector<2x32xf32>
    %45 = vector.extract_strided_slice %38 {offsets = [0, 32], sizes = [2, 32], strides = [1, 1]} : vector<2x128xf32> to vector<2x32xf32>
    %46 = arith.negf %45 : vector<2x32xf32>
    %47 = math.exp %46 : vector<2x32xf32>
    %cst_14 = arith.constant 1.000000e+00 : f32
    %48 = vector.broadcast %cst_14 : f32 to vector<2x32xf32>
    %49 = arith.addf %48, %47 : vector<2x32xf32>
    %50 = arith.divf %48, %49 : vector<2x32xf32>
    %51 = vector.extract_strided_slice %38 {offsets = [0, 64], sizes = [2, 32], strides = [1, 1]} : vector<2x128xf32> to vector<2x32xf32>
    %52 = math.tanh %51 : vector<2x32xf32>
    %53 = vector.extract_strided_slice %38 {offsets = [0, 96], sizes = [2, 32], strides = [1, 1]} : vector<2x128xf32> to vector<2x32xf32>
    %54 = arith.negf %53 : vector<2x32xf32>
    %55 = math.exp %54 : vector<2x32xf32>
    %cst_15 = arith.constant 1.000000e+00 : f32
    %56 = vector.broadcast %cst_15 : f32 to vector<2x32xf32>
    %57 = arith.addf %56, %55 : vector<2x32xf32>
    %58 = arith.divf %56, %57 : vector<2x32xf32>
    %59 = arith.mulf %50, %30 : vector<2x32xf32>
    %60 = arith.mulf %44, %52 : vector<2x32xf32>
    %61 = arith.addf %59, %60 : vector<2x32xf32>
    %62 = math.tanh %61 : vector<2x32xf32>
    %63 = arith.mulf %58, %62 : vector<2x32xf32>
    %c2_i32 = arith.constant 2 : i32
    %c0_16 = arith.constant 0 : index
    %c0_17 = arith.constant 0 : index
    %64 = vector.load %arg1[%c0_16, %c0_17] : memref<32x128xf32, #tpu.memory_space<vmem>>, vector<32x128xf32>
    %cst_18 = arith.constant dense<0.000000e+00> : vector<2x128xf32>
    %65 = tpu.matmul %63, %64, %cst_18 {dimension_numbers = #tpu.dot_dimension_numbers<[1], [0], [0], [1], [0, 0, 1, 1], [], []>} : vector<2x32xf32>, vector<32x128xf32>, vector<2x128xf32> -> vector<2x128xf32>
    %66 = arith.index_cast %c2_i32 : i32 to index
    %c0_19 = arith.constant 0 : index
    %c0_20 = arith.constant 0 : index
    %67 = vector.load %arg0[%66, %c0_19, %c0_20] : memref<8x2x128xf32, #tpu.memory_space<vmem>>, vector<1x2x128xf32>
    %68 = vector.shape_cast %67 : vector<1x2x128xf32> to vector<2x128xf32>
    %69 = arith.addf %65, %68 : vector<2x128xf32>
    %70 = vector.extract_strided_slice %69 {offsets = [0, 0], sizes = [2, 32], strides = [1, 1]} : vector<2x128xf32> to vector<2x32xf32>
    %71 = arith.negf %70 : vector<2x32xf32>
    %72 = math.exp %71 : vector<2x32xf32>
    %cst_21 = arith.constant 1.000000e+00 : f32
    %73 = vector.broadcast %cst_21 : f32 to vector<2x32xf32>
    %74 = arith.addf %73, %72 : vector<2x32xf32>
    %75 = arith.divf %73, %74 : vector<2x32xf32>
    %76 = vector.extract_strided_slice %69 {offsets = [0, 32], sizes = [2, 32], strides = [1, 1]} : vector<2x128xf32> to vector<2x32xf32>
    %77 = arith.negf %76 : vector<2x32xf32>
    %78 = math.exp %77 : vector<2x32xf32>
    %cst_22 = arith.constant 1.000000e+00 : f32
    %79 = vector.broadcast %cst_22 : f32 to vector<2x32xf32>
    %80 = arith.addf %79, %78 : vector<2x32xf32>
    %81 = arith.divf %79, %80 : vector<2x32xf32>
    %82 = vector.extract_strided_slice %69 {offsets = [0, 64], sizes = [2, 32], strides = [1, 1]} : vector<2x128xf32> to vector<2x32xf32>
    %83 = math.tanh %82 : vector<2x32xf32>
    %84 = vector.extract_strided_slice %69 {offsets = [0, 96], sizes = [2, 32], strides = [1, 1]} : vector<2x128xf32> to vector<2x32xf32>
    %85 = arith.negf %84 : vector<2x32xf32>
    %86 = math.exp %85 : vector<2x32xf32>
    %cst_23 = arith.constant 1.000000e+00 : f32
    %87 = vector.broadcast %cst_23 : f32 to vector<2x32xf32>
    %88 = arith.addf %87, %86 : vector<2x32xf32>
    %89 = arith.divf %87, %88 : vector<2x32xf32>
    %90 = arith.mulf %81, %61 : vector<2x32xf32>
    %91 = arith.mulf %75, %83 : vector<2x32xf32>
    %92 = arith.addf %90, %91 : vector<2x32xf32>
    %93 = math.tanh %92 : vector<2x32xf32>
    %94 = arith.mulf %89, %93 : vector<2x32xf32>
    %c3_i32 = arith.constant 3 : i32
    %c0_24 = arith.constant 0 : index
    %c0_25 = arith.constant 0 : index
    %95 = vector.load %arg1[%c0_24, %c0_25] : memref<32x128xf32, #tpu.memory_space<vmem>>, vector<32x128xf32>
    %cst_26 = arith.constant dense<0.000000e+00> : vector<2x128xf32>
    %96 = tpu.matmul %94, %95, %cst_26 {dimension_numbers = #tpu.dot_dimension_numbers<[1], [0], [0], [1], [0, 0, 1, 1], [], []>} : vector<2x32xf32>, vector<32x128xf32>, vector<2x128xf32> -> vector<2x128xf32>
    %97 = arith.index_cast %c3_i32 : i32 to index
    %c0_27 = arith.constant 0 : index
    %c0_28 = arith.constant 0 : index
    %98 = vector.load %arg0[%97, %c0_27, %c0_28] : memref<8x2x128xf32, #tpu.memory_space<vmem>>, vector<1x2x128xf32>
    %99 = vector.shape_cast %98 : vector<1x2x128xf32> to vector<2x128xf32>
    %100 = arith.addf %96, %99 : vector<2x128xf32>
    %101 = vector.extract_strided_slice %100 {offsets = [0, 0], sizes = [2, 32], strides = [1, 1]} : vector<2x128xf32> to vector<2x32xf32>
    %102 = arith.negf %101 : vector<2x32xf32>
    %103 = math.exp %102 : vector<2x32xf32>
    %cst_29 = arith.constant 1.000000e+00 : f32
    %104 = vector.broadcast %cst_29 : f32 to vector<2x32xf32>
    %105 = arith.addf %104, %103 : vector<2x32xf32>
    %106 = arith.divf %104, %105 : vector<2x32xf32>
    %107 = vector.extract_strided_slice %100 {offsets = [0, 32], sizes = [2, 32], strides = [1, 1]} : vector<2x128xf32> to vector<2x32xf32>
    %108 = arith.negf %107 : vector<2x32xf32>
    %109 = math.exp %108 : vector<2x32xf32>
    %cst_30 = arith.constant 1.000000e+00 : f32
    %110 = vector.broadcast %cst_30 : f32 to vector<2x32xf32>
    %111 = arith.addf %110, %109 : vector<2x32xf32>
    %112 = arith.divf %110, %111 : vector<2x32xf32>
    %113 = vector.extract_strided_slice %100 {offsets = [0, 64], sizes = [2, 32], strides = [1, 1]} : vector<2x128xf32> to vector<2x32xf32>
    %114 = math.tanh %113 : vector<2x32xf32>
    %115 = vector.extract_strided_slice %100 {offsets = [0, 96], sizes = [2, 32], strides = [1, 1]} : vector<2x128xf32> to vector<2x32xf32>
    %116 = arith.negf %115 : vector<2x32xf32>
    %117 = math.exp %116 : vector<2x32xf32>
    %cst_31 = arith.constant 1.000000e+00 : f32
    %118 = vector.broadcast %cst_31 : f32 to vector<2x32xf32>
    %119 = arith.addf %118, %117 : vector<2x32xf32>
    %120 = arith.divf %118, %119 : vector<2x32xf32>
    %121 = arith.mulf %112, %92 : vector<2x32xf32>
    %122 = arith.mulf %106, %114 : vector<2x32xf32>
    %123 = arith.addf %121, %122 : vector<2x32xf32>
    %124 = math.tanh %123 : vector<2x32xf32>
    %125 = arith.mulf %120, %124 : vector<2x32xf32>
    %c4_i32 = arith.constant 4 : i32
    %c0_32 = arith.constant 0 : index
    %c0_33 = arith.constant 0 : index
    %126 = vector.load %arg1[%c0_32, %c0_33] : memref<32x128xf32, #tpu.memory_space<vmem>>, vector<32x128xf32>
    %cst_34 = arith.constant dense<0.000000e+00> : vector<2x128xf32>
    %127 = tpu.matmul %125, %126, %cst_34 {dimension_numbers = #tpu.dot_dimension_numbers<[1], [0], [0], [1], [0, 0, 1, 1], [], []>} : vector<2x32xf32>, vector<32x128xf32>, vector<2x128xf32> -> vector<2x128xf32>
    %128 = arith.index_cast %c4_i32 : i32 to index
    %c0_35 = arith.constant 0 : index
    %c0_36 = arith.constant 0 : index
    %129 = vector.load %arg0[%128, %c0_35, %c0_36] : memref<8x2x128xf32, #tpu.memory_space<vmem>>, vector<1x2x128xf32>
    %130 = vector.shape_cast %129 : vector<1x2x128xf32> to vector<2x128xf32>
    %131 = arith.addf %127, %130 : vector<2x128xf32>
    %132 = vector.extract_strided_slice %131 {offsets = [0, 0], sizes = [2, 32], strides = [1, 1]} : vector<2x128xf32> to vector<2x32xf32>
    %133 = arith.negf %132 : vector<2x32xf32>
    %134 = math.exp %133 : vector<2x32xf32>
    %cst_37 = arith.constant 1.000000e+00 : f32
    %135 = vector.broadcast %cst_37 : f32 to vector<2x32xf32>
    %136 = arith.addf %135, %134 : vector<2x32xf32>
    %137 = arith.divf %135, %136 : vector<2x32xf32>
    %138 = vector.extract_strided_slice %131 {offsets = [0, 32], sizes = [2, 32], strides = [1, 1]} : vector<2x128xf32> to vector<2x32xf32>
    %139 = arith.negf %138 : vector<2x32xf32>
    %140 = math.exp %139 : vector<2x32xf32>
    %cst_38 = arith.constant 1.000000e+00 : f32
    %141 = vector.broadcast %cst_38 : f32 to vector<2x32xf32>
    %142 = arith.addf %141, %140 : vector<2x32xf32>
    %143 = arith.divf %141, %142 : vector<2x32xf32>
    %144 = vector.extract_strided_slice %131 {offsets = [0, 64], sizes = [2, 32], strides = [1, 1]} : vector<2x128xf32> to vector<2x32xf32>
    %145 = math.tanh %144 : vector<2x32xf32>
    %146 = vector.extract_strided_slice %131 {offsets = [0, 96], sizes = [2, 32], strides = [1, 1]} : vector<2x128xf32> to vector<2x32xf32>
    %147 = arith.negf %146 : vector<2x32xf32>
    %148 = math.exp %147 : vector<2x32xf32>
    %cst_39 = arith.constant 1.000000e+00 : f32
    %149 = vector.broadcast %cst_39 : f32 to vector<2x32xf32>
    %150 = arith.addf %149, %148 : vector<2x32xf32>
    %151 = arith.divf %149, %150 : vector<2x32xf32>
    %152 = arith.mulf %143, %123 : vector<2x32xf32>
    %153 = arith.mulf %137, %145 : vector<2x32xf32>
    %154 = arith.addf %152, %153 : vector<2x32xf32>
    %155 = math.tanh %154 : vector<2x32xf32>
    %156 = arith.mulf %151, %155 : vector<2x32xf32>
    %c5_i32 = arith.constant 5 : i32
    %c0_40 = arith.constant 0 : index
    %c0_41 = arith.constant 0 : index
    %157 = vector.load %arg1[%c0_40, %c0_41] : memref<32x128xf32, #tpu.memory_space<vmem>>, vector<32x128xf32>
    %cst_42 = arith.constant dense<0.000000e+00> : vector<2x128xf32>
    %158 = tpu.matmul %156, %157, %cst_42 {dimension_numbers = #tpu.dot_dimension_numbers<[1], [0], [0], [1], [0, 0, 1, 1], [], []>} : vector<2x32xf32>, vector<32x128xf32>, vector<2x128xf32> -> vector<2x128xf32>
    %159 = arith.index_cast %c5_i32 : i32 to index
    %c0_43 = arith.constant 0 : index
    %c0_44 = arith.constant 0 : index
    %160 = vector.load %arg0[%159, %c0_43, %c0_44] : memref<8x2x128xf32, #tpu.memory_space<vmem>>, vector<1x2x128xf32>
    %161 = vector.shape_cast %160 : vector<1x2x128xf32> to vector<2x128xf32>
    %162 = arith.addf %158, %161 : vector<2x128xf32>
    %163 = vector.extract_strided_slice %162 {offsets = [0, 0], sizes = [2, 32], strides = [1, 1]} : vector<2x128xf32> to vector<2x32xf32>
    %164 = arith.negf %163 : vector<2x32xf32>
    %165 = math.exp %164 : vector<2x32xf32>
    %cst_45 = arith.constant 1.000000e+00 : f32
    %166 = vector.broadcast %cst_45 : f32 to vector<2x32xf32>
    %167 = arith.addf %166, %165 : vector<2x32xf32>
    %168 = arith.divf %166, %167 : vector<2x32xf32>
    %169 = vector.extract_strided_slice %162 {offsets = [0, 32], sizes = [2, 32], strides = [1, 1]} : vector<2x128xf32> to vector<2x32xf32>
    %170 = arith.negf %169 : vector<2x32xf32>
    %171 = math.exp %170 : vector<2x32xf32>
    %cst_46 = arith.constant 1.000000e+00 : f32
    %172 = vector.broadcast %cst_46 : f32 to vector<2x32xf32>
    %173 = arith.addf %172, %171 : vector<2x32xf32>
    %174 = arith.divf %172, %173 : vector<2x32xf32>
    %175 = vector.extract_strided_slice %162 {offsets = [0, 64], sizes = [2, 32], strides = [1, 1]} : vector<2x128xf32> to vector<2x32xf32>
    %176 = math.tanh %175 : vector<2x32xf32>
    %177 = vector.extract_strided_slice %162 {offsets = [0, 96], sizes = [2, 32], strides = [1, 1]} : vector<2x128xf32> to vector<2x32xf32>
    %178 = arith.negf %177 : vector<2x32xf32>
    %179 = math.exp %178 : vector<2x32xf32>
    %cst_47 = arith.constant 1.000000e+00 : f32
    %180 = vector.broadcast %cst_47 : f32 to vector<2x32xf32>
    %181 = arith.addf %180, %179 : vector<2x32xf32>
    %182 = arith.divf %180, %181 : vector<2x32xf32>
    %183 = arith.mulf %174, %154 : vector<2x32xf32>
    %184 = arith.mulf %168, %176 : vector<2x32xf32>
    %185 = arith.addf %183, %184 : vector<2x32xf32>
    %186 = math.tanh %185 : vector<2x32xf32>
    %187 = arith.mulf %182, %186 : vector<2x32xf32>
    %c6_i32 = arith.constant 6 : i32
    %c0_48 = arith.constant 0 : index
    %c0_49 = arith.constant 0 : index
    %188 = vector.load %arg1[%c0_48, %c0_49] : memref<32x128xf32, #tpu.memory_space<vmem>>, vector<32x128xf32>
    %cst_50 = arith.constant dense<0.000000e+00> : vector<2x128xf32>
    %189 = tpu.matmul %187, %188, %cst_50 {dimension_numbers = #tpu.dot_dimension_numbers<[1], [0], [0], [1], [0, 0, 1, 1], [], []>} : vector<2x32xf32>, vector<32x128xf32>, vector<2x128xf32> -> vector<2x128xf32>
    %190 = arith.index_cast %c6_i32 : i32 to index
    %c0_51 = arith.constant 0 : index
    %c0_52 = arith.constant 0 : index
    %191 = vector.load %arg0[%190, %c0_51, %c0_52] : memref<8x2x128xf32, #tpu.memory_space<vmem>>, vector<1x2x128xf32>
    %192 = vector.shape_cast %191 : vector<1x2x128xf32> to vector<2x128xf32>
    %193 = arith.addf %189, %192 : vector<2x128xf32>
    %194 = vector.extract_strided_slice %193 {offsets = [0, 0], sizes = [2, 32], strides = [1, 1]} : vector<2x128xf32> to vector<2x32xf32>
    %195 = arith.negf %194 : vector<2x32xf32>
    %196 = math.exp %195 : vector<2x32xf32>
    %cst_53 = arith.constant 1.000000e+00 : f32
    %197 = vector.broadcast %cst_53 : f32 to vector<2x32xf32>
    %198 = arith.addf %197, %196 : vector<2x32xf32>
    %199 = arith.divf %197, %198 : vector<2x32xf32>
    %200 = vector.extract_strided_slice %193 {offsets = [0, 32], sizes = [2, 32], strides = [1, 1]} : vector<2x128xf32> to vector<2x32xf32>
    %201 = arith.negf %200 : vector<2x32xf32>
    %202 = math.exp %201 : vector<2x32xf32>
    %cst_54 = arith.constant 1.000000e+00 : f32
    %203 = vector.broadcast %cst_54 : f32 to vector<2x32xf32>
    %204 = arith.addf %203, %202 : vector<2x32xf32>
    %205 = arith.divf %203, %204 : vector<2x32xf32>
    %206 = vector.extract_strided_slice %193 {offsets = [0, 64], sizes = [2, 32], strides = [1, 1]} : vector<2x128xf32> to vector<2x32xf32>
    %207 = math.tanh %206 : vector<2x32xf32>
    %208 = vector.extract_strided_slice %193 {offsets = [0, 96], sizes = [2, 32], strides = [1, 1]} : vector<2x128xf32> to vector<2x32xf32>
    %209 = arith.negf %208 : vector<2x32xf32>
    %210 = math.exp %209 : vector<2x32xf32>
    %cst_55 = arith.constant 1.000000e+00 : f32
    %211 = vector.broadcast %cst_55 : f32 to vector<2x32xf32>
    %212 = arith.addf %211, %210 : vector<2x32xf32>
    %213 = arith.divf %211, %212 : vector<2x32xf32>
    %214 = arith.mulf %205, %185 : vector<2x32xf32>
    %215 = arith.mulf %199, %207 : vector<2x32xf32>
    %216 = arith.addf %214, %215 : vector<2x32xf32>
    %217 = math.tanh %216 : vector<2x32xf32>
    %218 = arith.mulf %213, %217 : vector<2x32xf32>
    %c7_i32 = arith.constant 7 : i32
    %c0_56 = arith.constant 0 : index
    %c0_57 = arith.constant 0 : index
    %219 = vector.load %arg1[%c0_56, %c0_57] : memref<32x128xf32, #tpu.memory_space<vmem>>, vector<32x128xf32>
    %cst_58 = arith.constant dense<0.000000e+00> : vector<2x128xf32>
    %220 = tpu.matmul %218, %219, %cst_58 {dimension_numbers = #tpu.dot_dimension_numbers<[1], [0], [0], [1], [0, 0, 1, 1], [], []>} : vector<2x32xf32>, vector<32x128xf32>, vector<2x128xf32> -> vector<2x128xf32>
    %221 = arith.index_cast %c7_i32 : i32 to index
    %c0_59 = arith.constant 0 : index
    %c0_60 = arith.constant 0 : index
    %222 = vector.load %arg0[%221, %c0_59, %c0_60] : memref<8x2x128xf32, #tpu.memory_space<vmem>>, vector<1x2x128xf32>
    %223 = vector.shape_cast %222 : vector<1x2x128xf32> to vector<2x128xf32>
    %224 = arith.addf %220, %223 : vector<2x128xf32>
    %225 = vector.extract_strided_slice %224 {offsets = [0, 0], sizes = [2, 32], strides = [1, 1]} : vector<2x128xf32> to vector<2x32xf32>
    %226 = arith.negf %225 : vector<2x32xf32>
    %227 = math.exp %226 : vector<2x32xf32>
    %cst_61 = arith.constant 1.000000e+00 : f32
    %228 = vector.broadcast %cst_61 : f32 to vector<2x32xf32>
    %229 = arith.addf %228, %227 : vector<2x32xf32>
    %230 = arith.divf %228, %229 : vector<2x32xf32>
    %231 = vector.extract_strided_slice %224 {offsets = [0, 32], sizes = [2, 32], strides = [1, 1]} : vector<2x128xf32> to vector<2x32xf32>
    %232 = arith.negf %231 : vector<2x32xf32>
    %233 = math.exp %232 : vector<2x32xf32>
    %cst_62 = arith.constant 1.000000e+00 : f32
    %234 = vector.broadcast %cst_62 : f32 to vector<2x32xf32>
    %235 = arith.addf %234, %233 : vector<2x32xf32>
    %236 = arith.divf %234, %235 : vector<2x32xf32>
    %237 = vector.extract_strided_slice %224 {offsets = [0, 64], sizes = [2, 32], strides = [1, 1]} : vector<2x128xf32> to vector<2x32xf32>
    %238 = math.tanh %237 : vector<2x32xf32>
    %239 = vector.extract_strided_slice %224 {offsets = [0, 96], sizes = [2, 32], strides = [1, 1]} : vector<2x128xf32> to vector<2x32xf32>
    %240 = arith.negf %239 : vector<2x32xf32>
    %241 = math.exp %240 : vector<2x32xf32>
    %cst_63 = arith.constant 1.000000e+00 : f32
    %242 = vector.broadcast %cst_63 : f32 to vector<2x32xf32>
    %243 = arith.addf %242, %241 : vector<2x32xf32>
    %244 = arith.divf %242, %243 : vector<2x32xf32>
    %245 = arith.mulf %236, %216 : vector<2x32xf32>
    %246 = arith.mulf %230, %238 : vector<2x32xf32>
    %247 = arith.addf %245, %246 : vector<2x32xf32>
    %248 = math.tanh %247 : vector<2x32xf32>
    %249 = arith.mulf %244, %248 : vector<2x32xf32>
    %c8_i32 = arith.constant 8 : i32
    %c0_64 = arith.constant 0 : index
    %c0_65 = arith.constant 0 : index
    %250 = vector.load %arg3[%c0_64, %c0_65] : memref<32x32xf32, #tpu.memory_space<vmem>>, vector<32x32xf32>
    %cst_66 = arith.constant dense<0.000000e+00> : vector<2x32xf32>
    %251 = tpu.matmul %249, %250, %cst_66 {dimension_numbers = #tpu.dot_dimension_numbers<[1], [0], [0], [1], [0, 0, 1, 1], [], []>} : vector<2x32xf32>, vector<32x32xf32>, vector<2x32xf32> -> vector<2x32xf32>
    %c0_67 = arith.constant 0 : index
    %c0_68 = arith.constant 0 : index
    %252 = vector.load %arg2[%c0_67, %c0_68] : memref<2x32xf32, #tpu.memory_space<vmem>>, vector<2x32xf32>
    %253 = arith.addf %251, %252 : vector<2x32xf32>
    %cst_69 = arith.constant 0.000000e+00 : f32
    %254 = vector.broadcast %cst_69 : f32 to vector<2x32xf32>
    %255 = arith.maximumf %253, %254 : vector<2x32xf32>
    %c0_70 = arith.constant 0 : index
    %c0_71 = arith.constant 0 : index
    %256 = vector.load %arg4[%c0_70, %c0_71] : memref<32x128xf32, #tpu.memory_space<vmem>>, vector<32x128xf32>
    %cst_72 = arith.constant dense<0.000000e+00> : vector<2x128xf32>
    %257 = tpu.matmul %255, %256, %cst_72 {dimension_numbers = #tpu.dot_dimension_numbers<[1], [0], [0], [1], [0, 0, 1, 1], [], []>} : vector<2x32xf32>, vector<32x128xf32>, vector<2x128xf32> -> vector<2x128xf32>
    %c0_73 = arith.constant 0 : index
    %c0_74 = arith.constant 0 : index
    %258 = vector.load %arg5[%c0_73, %c0_74] : memref<1x128xf32, #tpu.memory_space<vmem>>, vector<1x128xf32>
    %259 = vector.broadcast %258 : vector<1x128xf32> to vector<2x128xf32>
    %260 = arith.addf %257, %259 : vector<2x128xf32>
    %cst_75 = arith.constant dense<0xFF800000> : vector<2xf32>
    %261 = vector.multi_reduction <maximumf>, %260, %cst_75 [1] : vector<2x128xf32> to vector<2xf32>
    %262 = vector.shape_cast %261 : vector<2xf32> to vector<2x1xf32>
    %263 = vector.broadcast %262 : vector<2x1xf32> to vector<2x128xf32>
    %264 = arith.subf %260, %263 : vector<2x128xf32>
    %265 = math.exp %264 : vector<2x128xf32>
    %cst_76 = arith.constant dense<0.000000e+00> : vector<2xf32>
    %266 = vector.multi_reduction <add>, %265, %cst_76 [1] : vector<2x128xf32> to vector<2xf32>
    %267 = vector.shape_cast %266 : vector<2xf32> to vector<2x1xf32>
    %268 = tpu.reciprocal %267 : vector<2x1xf32> -> vector<2x1xf32>
    %269 = vector.broadcast %268 : vector<2x1xf32> to vector<2x128xf32>
    %270 = arith.mulf %265, %269 : vector<2x128xf32>
    %c0_77 = arith.constant 0 : index
    %c0_78 = arith.constant 0 : index
    %271 = vector.load %arg6[%c0_77, %c0_78] : memref<2x128xf32, #tpu.memory_space<vmem>>, vector<2x128xf32>
    tpu.vector_store %arg6[%c0_77, %c0_78], %270 {strides = array<i32>} : memref<2x128xf32, #tpu.memory_space<vmem>>, vector<2x128xf32>,
    return
  }
}

</mosaic_0001>

<bundles_post_ra>
// kernel: mary_lstm_forward.1
= control target key start
LH: loop header
LB: loop body
LE: loop exit
PB: predicated region body
PF: predicated region fallthrough
CT: control target
= control target key end

     0   :  { %v1306_v1 = vmov 0.0   ;;  %vm1307_vm0 = vmmov 0   ;;  %s1557_s0 = inlined_call_operand.vmem [shape: f32[8,2,128], index: 0, kind: input, shape index: {}]   ;;  %s1558_s1 = inlined_call_operand.vmem [shape: f32[32,128], index: 1, kind: input, shape index: {}]   ;;  %s1559_s2 = inlined_call_operand.vmem [shape: f32[2,32], index: 2, kind: input, shape index: {}]   ;;  %s1560_s3 = inlined_call_operand.vmem [shape: f32[32,32], index: 3, kind: input, shape index: {}]   ;;  %s1561_s4 = inlined_call_operand.vmem [shape: f32[32,128], index: 4, kind: input, shape index: {}]   ;;  %s1562_s5 = inlined_call_operand.vmem [shape: f32[1,128], index: 5, kind: input, shape index: {}]   ;;  %s1563_s6 = inlined_call_operand.hbm [shape: f32[2,128], index: 6, kind: output, shape index: {}]  }
   0x1   :  { %v1349_v0 = vld [vmem:[%s1558_s1 + $0x18] sm:$0xff]  ;;  %1101 = vmatprep.subr.mxu0 %v1306_v1  ;;  %v1355_v2 = vld [vmem:[%s1558_s1 + $0x10] sm:$0xff]  ;;  %1109 = vmatprep.mubr.msk.f32.mxu0 %vm1307_vm0, %v1306_v1 }
   0x2   :  { %11 = vsyncpa [#allocation3], 0  ;;  %1102 = vmatpush3.msra.mxu0 %v1349_v0  ;;  %1112 = vmatprep.subr.mxu1 %v1306_v1  ;;  %v1365_v3 = vld [vmem:[%s1558_s1 + $0x8] sm:$0xff]  ;;  %v1374_v4 = vld [vmem:[%s1558_s1] sm:$0xff]  ;;  %s1308_s30 = smov 64   ;;  %s1309_s7 = smov 32  }
   0x3   :  { %1103 = vmatprep.subr.mxu0 %v1306_v1  ;;  %1113 = vmatpush3.msra.mxu1 %v1349_v0  ;;  %v28_v5 = vld [vmem:[%s1557_s0] sm:$0x3]  ;;  %vm29_vm1 = vcmask 261120   ;;  %v1027_v23 = vld [vmem:[%s1557_s0 + $0x2] sm:$0x3]  ;;  %vm999_vm2 = vcmask 1041408  }
   0x4   :  { %1104 = vmatpush3.msra.mxu0 %v1355_v2  ;;  %1114 = vmatprep.subr.mxu1 %v1306_v1  ;;  %v1030_v41 = vld [vmem:[%s1557_s0 + $0x4] sm:$0x3]  ;;  %v1033_v59 = vld [vmem:[%s1557_s0 + $0x6] sm:$0x3] }
   0x5   :  { %1105 = vmatprep.subr.mxu0 %v1306_v1  ;;  %1115 = vmatpush3.msra.mxu1 %v1355_v2 }
   0x6   :  { %1106 = vmatpush3.msra.mxu0 %v1365_v3  ;;  %1116 = vmatprep.subr.mxu1 %v1306_v1 }
   0x7   :  { %1107 = vmatprep.subr.mxu0 %v1306_v1  ;;  %1117 = vmatpush3.msra.mxu1 %v1365_v3 }
   0x8   :  { %1108 = vmatpush3.msra.mxu0 %v1374_v4  ;;  %1118 = vmatprep.subr.mxu1 %v1306_v1 }
   0x9   :  { %1110 = vmatmul.mubr.f32.vlgmr.msra.gmra.mxu0 %v1306_v1  ;;  %1119 = vmatpush3.msra.mxu1 %v1374_v4 }
   0xa   :  { %1120 = vmatprep.mubr.msk.f32.mxu1 %vm1307_vm0, %v1306_v1  ;;  %1123 = vmatprep.subr.mxu0 %v1306_v1 }
   0xb   :  { %1124 = vmatpush3.msra.mxu0 %v1349_v0  ;;  %1131 = vmatprep.mubr.msk.f32.mxu0 %vm1307_vm0, %v1306_v1 }
   0xc   :  { %1125 = vmatprep.subr.mxu0 %v1306_v1  ;;  %1134 = vmatprep.subr.mxu1 %v1306_v1 }
   0xd   :  { %1126 = vmatpush3.msra.mxu0 %v1355_v2 }
   0xe   :  { %1127 = vmatprep.subr.mxu0 %v1306_v1 }
   0xf   :  { %1128 = vmatpush3.msra.mxu0 %v1365_v3 }
  0x10   :  { %1129 = vmatprep.subr.mxu0 %v1306_v1 }
  0x11   :  { %1130 = vmatpush3.msra.mxu0 %v1374_v4 }
  0x12   :  { %1145 = vmatprep.subr.mxu0 %v1306_v1 }
  0xc9   :  { %v99_v6 = vpop.f32.mrf.mxu0 }
  0xca   :  { %v100_v7 = vadd.f32 %v99_v6, %v28_v5 }
  0xcb   :  { %v1111_v8 = vpop.f32.mrf.mxu0 }
  0xcc   :  { %1216 = vtanh.f32 %v100_v7  ;;  %v1026_v10 = vmul.f32 -1.442695, %v100_v7 }
  0xce   :  { %1218 = vpow2.f32 %v1026_v10 }
  0xd9   :  { %v1217_v9 = vpop.eup %1216 }
  0xda   :  { %112 = vrot.lane.b32.xlu0 %v1217_v9, %s1308_s30 }
  0xdb   :  { %v1219_v11 = vpop.eup %1218 }
  0xdc   :  { %v106_v12 = vadd.f32 1.0, %v1219_v11 }
  0xde   :  { %1220 = vrcp.f32 %v106_v12 }
  0xeb   :  { %v1221_v13 = vpop.eup %1220 }
  0xec   :  { %v110_v16 = vmul.f32 0.0, %v1221_v13 }
 0x14c   :  { %v113_v14 = vpop.permute.xlu0 %112 }
 0x14d   :  { %v115_v15 = vmul.f32 %v1221_v13, %v113_v14 }
 0x14f   :  { %117 = vrot.lane.b32.xlu0 %v115_v15, %s1309_s7 }
 0x1c1   :  { %v118_v17 = vpop.permute.xlu0 %117 }
 0x1c2   :  { %v120_v18 = vadd.f32 %v118_v17, %v110_v16 }
 0x1c4   :  { %1222 = vtanh.f32 %v120_v18 }
 0x1d1   :  { %v1223_v19 = vpop.eup %1222 }
 0x1d2   :  { %123 = vrot.lane.b32.xlu1 %v1223_v19, %s1308_s30 }
 0x244   :  { %v124_v20 = vpop.permute.xlu1 %123 }
 0x245   :  { %v126_v21 = vmul.f32 %v1221_v13, %v124_v20 }
 0x247   :  { %130 = vrot.lane.b32.xlu1 %v126_v21, %s1309_s7 }
 0x2b9   :  { %v131_v22 = vpop.permute.xlu1 %130 }
 0x2ba   :  { %1121 = vmatmul.mubr.msk.f32.vlgmr.msra.gmra.mxu1 %vm29_vm1, %v131_v22 }
 0x2bb   :  { %1135 = vmatpush3.msra.mxu1 %v1349_v0  ;;  %1142 = vmatprep.mubr.msk.f32.mxu1 %vm1307_vm0, %v1306_v1 }
 0x2bc   :  { %1136 = vmatprep.subr.mxu1 %v1306_v1 }
 0x2bd   :  { %1137 = vmatpush3.msra.mxu1 %v1355_v2 }
 0x2be   :  { %1138 = vmatprep.subr.mxu1 %v1306_v1 }
 0x2bf   :  { %1139 = vmatpush3.msra.mxu1 %v1365_v3 }
 0x2c0   :  { %1140 = vmatprep.subr.mxu1 %v1306_v1 }
 0x2c1   :  { %1141 = vmatpush3.msra.mxu1 %v1374_v4 }
 0x2c2   :  { %1156 = vmatprep.subr.mxu1 %v1306_v1 }
 0x37a   :  { %v200_v24 = vpop.f32.mrf.mxu1 }
 0x37b   :  { %v201_v25 = vadd.f32 %v1027_v23, %v200_v24 }
 0x37c   :  { %v1122_v26 = vpop.f32.mrf.mxu1 }
 0x37d   :  { %1224 = vtanh.f32 %v201_v25  ;;  %v1029_v28 = vmul.f32 -1.442695, %v201_v25 }
 0x37f   :  { %1226 = vpow2.f32 %v1029_v28 }
 0x38a   :  { %v1225_v27 = vpop.eup %1224 }
 0x38b   :  { %213 = vrot.lane.b32.xlu0 %v1225_v27, %s1308_s30 }
 0x38c   :  { %v1227_v29 = vpop.eup %1226 }
 0x38d   :  { %v207_v30 = vadd.f32 1.0, %v1227_v29 }
 0x38f   :  { %1228 = vrcp.f32 %v207_v30 }
 0x39c   :  { %v1229_v31 = vpop.eup %1228 }
 0x39d   :  { %v211_v34 = vmul.f32 %v1229_v31, %v120_v18  ;;  %v1036_v18 = vld [vmem:[%s1557_s0 + $0x8] sm:$0x3] }
 0x3fd   :  { %v214_v32 = vpop.permute.xlu0 %213 }
 0x3fe   :  { %v216_v33 = vmul.f32 %v1229_v31, %v214_v32 }
 0x400   :  { %218 = vrot.lane.b32.xlu1 %v216_v33, %s1309_s7 }
 0x472   :  { %v219_v35 = vpop.permute.xlu1 %218 }
 0x473   :  { %v221_v36 = vadd.f32 %v219_v35, %v211_v34 }
 0x475   :  { %1230 = vtanh.f32 %v221_v36 }
 0x482   :  { %v1231_v37 = vpop.eup %1230 }
 0x483   :  { %224 = vrot.lane.b32.xlu0 %v1231_v37, %s1308_s30 }
 0x4f5   :  { %v225_v38 = vpop.permute.xlu0 %224 }
 0x4f6   :  { %v227_v39 = vmul.f32 %v1229_v31, %v225_v38 }
 0x4f8   :  { %231 = vrot.lane.b32.xlu1 %v227_v39, %s1309_s7 }
 0x56a   :  { %v232_v40 = vpop.permute.xlu1 %231 }
 0x56b   :  { %1132 = vmatmul.mubr.msk.f32.vlgmr.msra.gmra.mxu0 %vm29_vm1, %v232_v40 }
 0x56c   :  { %1146 = vmatpush3.msra.mxu0 %v1349_v0  ;;  %1153 = vmatprep.mubr.msk.f32.mxu0 %vm1307_vm0, %v1306_v1 }
 0x56d   :  { %1147 = vmatprep.subr.mxu0 %v1306_v1 }
 0x56e   :  { %1148 = vmatpush3.msra.mxu0 %v1355_v2 }
 0x56f   :  { %1149 = vmatprep.subr.mxu0 %v1306_v1 }
 0x570   :  { %1150 = vmatpush3.msra.mxu0 %v1365_v3 }
 0x571   :  { %1151 = vmatprep.subr.mxu0 %v1306_v1 }
 0x572   :  { %1152 = vmatpush3.msra.mxu0 %v1374_v4 }
 0x573   :  { %1167 = vmatprep.subr.mxu0 %v1306_v1 }
 0x62b   :  { %v301_v42 = vpop.f32.mrf.mxu0 }
 0x62c   :  { %v302_v43 = vadd.f32 %v1030_v41, %v301_v42 }
 0x62d   :  { %v1133_v44 = vpop.f32.mrf.mxu0 }
 0x62e   :  { %1232 = vtanh.f32 %v302_v43  ;;  %v1032_v46 = vmul.f32 -1.442695, %v302_v43 }
 0x630   :  { %1234 = vpow2.f32 %v1032_v46 }
 0x63b   :  { %v1233_v45 = vpop.eup %1232 }
 0x63c   :  { %314 = vrot.lane.b32.xlu0 %v1233_v45, %s1308_s30 }
 0x63d   :  { %v1235_v47 = vpop.eup %1234 }
 0x63e   :  { %v308_v48 = vadd.f32 1.0, %v1235_v47 }
 0x640   :  { %1236 = vrcp.f32 %v308_v48 }
 0x64d   :  { %v1237_v49 = vpop.eup %1236 }
 0x64e   :  { %v312_v52 = vmul.f32 %v1237_v49, %v221_v36 }
 0x6ae   :  { %v315_v50 = vpop.permute.xlu0 %314 }
 0x6af   :  { %v317_v51 = vmul.f32 %v1237_v49, %v315_v50  ;;  %v1042_v50 = vld [vmem:[%s1557_s0 + $0xc] sm:$0x3] }
 0x6b1   :  { %319 = vrot.lane.b32.xlu1 %v317_v51, %s1309_s7 }
 0x723   :  { %v320_v53 = vpop.permute.xlu1 %319 }
 0x724   :  { %v322_v54 = vadd.f32 %v320_v53, %v312_v52 }
 0x726   :  { %1238 = vtanh.f32 %v322_v54 }
 0x733   :  { %v1239_v55 = vpop.eup %1238 }
 0x734   :  { %325 = vrot.lane.b32.xlu0 %v1239_v55, %s1308_s30 }
 0x7a6   :  { %v326_v56 = vpop.permute.xlu0 %325 }
 0x7a7   :  { %v328_v57 = vmul.f32 %v1237_v49, %v326_v56 }
 0x7a9   :  { %332 = vrot.lane.b32.xlu1 %v328_v57, %s1309_s7 }
 0x81b   :  { %v333_v58 = vpop.permute.xlu1 %332 }
 0x81c   :  { %1143 = vmatmul.mubr.msk.f32.vlgmr.msra.gmra.mxu1 %vm29_vm1, %v333_v58 }
 0x81d   :  { %1157 = vmatpush3.msra.mxu1 %v1349_v0  ;;  %1164 = vmatprep.mubr.msk.f32.mxu1 %vm1307_vm0, %v1306_v1 }
 0x81e   :  { %1158 = vmatprep.subr.mxu1 %v1306_v1 }
 0x81f   :  { %1159 = vmatpush3.msra.mxu1 %v1355_v2 }
 0x820   :  { %1160 = vmatprep.subr.mxu1 %v1306_v1 }
 0x821   :  { %1161 = vmatpush3.msra.mxu1 %v1365_v3 }
 0x822   :  { %1162 = vmatprep.subr.mxu1 %v1306_v1 }
 0x823   :  { %1163 = vmatpush3.msra.mxu1 %v1374_v4 }
 0x824   :  { %1178 = vmatprep.subr.mxu1 %v1306_v1 }
 0x8dc   :  { %v402_v60 = vpop.f32.mrf.mxu1 }
 0x8dd   :  { %v403_v61 = vadd.f32 %v1033_v59, %v402_v60 }
 0x8de   :  { %v1144_v62 = vpop.f32.mrf.mxu1 }
 0x8df   :  { %1240 = vtanh.f32 %v403_v61  ;;  %v1035_v5 = vmul.f32 -1.442695, %v403_v61 }
 0x8e1   :  { %1242 = vpow2.f32 %v1035_v5 }
 0x8ec   :  { %v1241_v63 = vpop.eup %1240 }
 0x8ed   :  { %415 = vrot.lane.b32.xlu0 %v1241_v63, %s1308_s30 }
 0x8ee   :  { %v1243_v6 = vpop.eup %1242 }
 0x8ef   :  { %v409_v7 = vadd.f32 1.0, %v1243_v6 }
 0x8f1   :  { %1244 = vrcp.f32 %v409_v7 }
 0x8fe   :  { %v1245_v8 = vpop.eup %1244 }
 0x8ff   :  { %v413_v11 = vmul.f32 %v1245_v8, %v322_v54 }
 0x95f   :  { %v416_v9 = vpop.permute.xlu0 %415 }
 0x960   :  { %v418_v10 = vmul.f32 %v1245_v8, %v416_v9  ;;  %v1045_v9 = vld [vmem:[%s1557_s0 + $0xe] sm:$0x3] }
 0x962   :  { %420 = vrot.lane.b32.xlu1 %v418_v10, %s1309_s7 }
 0x9d4   :  { %v421_v12 = vpop.permute.xlu1 %420 }
 0x9d5   :  { %v423_v13 = vadd.f32 %v421_v12, %v413_v11 }
 0x9d7   :  { %1246 = vtanh.f32 %v423_v13 }
 0x9e4   :  { %v1247_v14 = vpop.eup %1246 }
 0x9e5   :  { %426 = vrot.lane.b32.xlu0 %v1247_v14, %s1308_s30 }
 0xa57   :  { %v427_v15 = vpop.permute.xlu0 %426 }
 0xa58   :  { %v429_v16 = vmul.f32 %v1245_v8, %v427_v15 }
 0xa5a   :  { %433 = vrot.lane.b32.xlu1 %v429_v16, %s1309_s7 }
 0xacc   :  { %v434_v17 = vpop.permute.xlu1 %433 }
 0xacd   :  { %1154 = vmatmul.mubr.msk.f32.vlgmr.msra.gmra.mxu0 %vm29_vm1, %v434_v17 }
 0xace   :  { %1168 = vmatpush3.msra.mxu0 %v1349_v0  ;;  %1175 = vmatprep.mubr.msk.f32.mxu0 %vm1307_vm0, %v1306_v1 }
 0xacf   :  { %1169 = vmatprep.subr.mxu0 %v1306_v1 }
 0xad0   :  { %1170 = vmatpush3.msra.mxu0 %v1355_v2 }
 0xad1   :  { %1171 = vmatprep.subr.mxu0 %v1306_v1 }
 0xad2   :  { %1172 = vmatpush3.msra.mxu0 %v1365_v3 }
 0xad3   :  { %1173 = vmatprep.subr.mxu0 %v1306_v1 }
 0xad4   :  { %1174 = vmatpush3.msra.mxu0 %v1374_v4 }
 0xad5   :  { %1189 = vmatprep.subr.mxu0 %v1306_v1 }
 0xb8d   :  { %v503_v19 = vpop.f32.mrf.mxu0 }
 0xb8e   :  { %v504_v20 = vadd.f32 %v1036_v18, %v503_v19 }
 0xb8f   :  { %v1155_v21 = vpop.f32.mrf.mxu0 }
 0xb90   :  { %1248 = vtanh.f32 %v504_v20  ;;  %v1038_v23 = vmul.f32 -1.442695, %v504_v20 }
 0xb92   :  { %1250 = vpow2.f32 %v1038_v23  ;;  %v837_v23 = vld [vmem:[%s1560_s3 + $0x18] sm:$0xff] }
 0xb9d   :  { %v1249_v22 = vpop.eup %1248 }
 0xb9e   :  { %516 = vrot.lane.b32.xlu0 %v1249_v22, %s1308_s30 }
 0xb9f   :  { %v1251_v24 = vpop.eup %1250 }
 0xba0   :  { %v510_v25 = vadd.f32 1.0, %v1251_v24  ;;  %v836_v24 = vld [vmem:[%s1560_s3 + $0x10] sm:$0xff] }
 0xba2   :  { %1252 = vrcp.f32 %v510_v25  ;;  %v835_v25 = vld [vmem:[%s1560_s3 + $0x8] sm:$0xff] }
 0xbaf   :  { %v1253_v26 = vpop.eup %1252 }
 0xbb0   :  { %v514_v29 = vmul.f32 %v1253_v26, %v423_v13 }
 0xc10   :  { %v517_v27 = vpop.permute.xlu0 %516 }
 0xc11   :  { %v519_v28 = vmul.f32 %v1253_v26, %v517_v27 }
 0xc13   :  { %521 = vrot.lane.b32.xlu1 %v519_v28, %s1309_s7  ;;  %v918_v28 = vld [vmem:[%s1561_s4 + $0x18] sm:$0xff] }
 0xc85   :  { %v522_v30 = vpop.permute.xlu1 %521 }
 0xc86   :  { %v524_v31 = vadd.f32 %v522_v30, %v514_v29 }
 0xc88   :  { %1254 = vtanh.f32 %v524_v31 }
 0xc95   :  { %v1255_v32 = vpop.eup %1254 }
 0xc96   :  { %527 = vrot.lane.b32.xlu0 %v1255_v32, %s1308_s30  ;;  %v917_v32 = vld [vmem:[%s1561_s4 + $0x10] sm:$0xff] }
 0xd08   :  { %v528_v33 = vpop.permute.xlu0 %527 }
 0xd09   :  { %v530_v34 = vmul.f32 %v1253_v26, %v528_v33  ;;  %v834_v26 = vld [vmem:[%s1560_s3] sm:$0xff]  ;;  %v916_v33 = vld [vmem:[%s1561_s4 + $0x8] sm:$0xff] }
 0xd0b   :  { %534 = vrot.lane.b32.xlu1 %v530_v34, %s1309_s7  ;;  %v915_v34 = vld [vmem:[%s1561_s4] sm:$0xff] }
 0xd7d   :  { %v535_v35 = vpop.permute.xlu1 %534 }
 0xd7e   :  { %1165 = vmatmul.mubr.msk.f32.vlgmr.msra.gmra.mxu1 %vm29_vm1, %v535_v35  ;;  %v838_v35 = vld [vmem:[%s1559_s2] sm:$0x3]  ;;  %s1310_s2 = smov [#allocation2]  }
 0xd7f   :  { %1179 = vmatpush3.msra.mxu1 %v1349_v0  ;;  %1186 = vmatprep.mubr.msk.f32.mxu1 %vm1307_vm0, %v1306_v1  ;;  %v1039_v0 = vld [vmem:[%s1557_s0 + $0xa] sm:$0x3]  ;;  %s1018_s4 = sshll.u32 %s1310_s2, 4  ;;  %s1019_s4 = int_to_ptr.vmem [resolvable:$true] %s1018_s4 }
 0xd80   :  { %1180 = vmatprep.subr.mxu1 %v1306_v1  ;;  %p1289_p1 = scmp.lt.s32.totalorder %s1019_s4, %s1019_s4 }
 0xd81   :  { %1181 = vmatpush3.msra.mxu1 %v1355_v2 }
 0xd82   :  { %1182 = vmatprep.subr.mxu1 %v1306_v1 }
 0xd83   :  { %1183 = vmatpush3.msra.mxu1 %v1365_v3 }
 0xd84   :  { %1184 = vmatprep.subr.mxu1 %v1306_v1 }
 0xd85   :  { %1185 = vmatpush3.msra.mxu1 %v1374_v4 }
 0xd86   :  { %1200 = vmatprep.subr.mxu1 %v1306_v1 }
 0xe3e   :  { %v604_v36 = vpop.f32.mrf.mxu1 }
 0xe3f   :  { %v605_v37 = vadd.f32 %v1039_v0, %v604_v36 }
 0xe40   :  { %v1166_v38 = vpop.f32.mrf.mxu1 }
 0xe41   :  { %1256 = vtanh.f32 %v605_v37  ;;  %v1041_v2 = vmul.f32 -1.442695, %v605_v37 }
 0xe43   :  { %1258 = vpow2.f32 %v1041_v2 }
 0xe4e   :  { %v1257_v39 = vpop.eup %1256 }
 0xe4f   :  { %617 = vrot.lane.b32.xlu0 %v1257_v39, %s1308_s30  ;;  %v1049_v39 = vld [vmem:[%s1562_s5] ss:$0 sm:$0xff]  ;;  %s1284_s5 = scalar_lea.vmem %s1019_s4, 32 }
 0xe50   :  { %v1259_v3 = vpop.eup %1258  ;;  %p1285_p0 = scmp.ne.s32.totalorder %s1019_s4, %s1284_s5  ;;  %p1290_p2 = scmp.lt.s32.totalorder %s1284_s5, %s1284_s5 }
 0xe51   :  { %v611_v40 = vadd.f32 1.0, %v1259_v3 }
 0xe52   :  { %p1291_p3 = por %p1290_p2, %p1289_p1 }
 0xe53   :  { %1260 = vrcp.f32 %v611_v40 }
 0xe54   :  { %p1292_p4 = pnand %p1291_p3, %p1285_p0 }
 0xe60   :  { %v1261_v41 = vpop.eup %1260 }
 0xe61   :  { %v615_v43 = vmul.f32 %v1261_v41, %v524_v31 }
 0xec1   :  { %v618_v4 = vpop.permute.xlu0 %617 }
 0xec2   :  { %v620_v42 = vmul.f32 %v1261_v41, %v618_v4 }
 0xec4   :  { %622 = vrot.lane.b32.xlu1 %v620_v42, %s1309_s7 }
 0xf36   :  { %v623_v44 = vpop.permute.xlu1 %622 }
 0xf37   :  { %v625_v45 = vadd.f32 %v623_v44, %v615_v43 }
 0xf39   :  { %1262 = vtanh.f32 %v625_v45 }
 0xf46   :  { %v1263_v46 = vpop.eup %1262 }
 0xf47   :  { %628 = vrot.lane.b32.xlu0 %v1263_v46, %s1308_s30 }
 0xfb9   :  { %v629_v47 = vpop.permute.xlu0 %628 }
 0xfba   :  { %v631_v48 = vmul.f32 %v1261_v41, %v629_v47 }
 0xfbc   :  { %635 = vrot.lane.b32.xlu1 %v631_v48, %s1309_s7 }
0x102e   :  { %v636_v49 = vpop.permute.xlu1 %635 }
0x102f   :  { %1176 = vmatmul.mubr.msk.f32.vlgmr.msra.gmra.mxu0 %vm29_vm1, %v636_v49 }
0x1030   :  { %1197 = vmatprep.mubr.msk.f32.mxu0 %vm1307_vm0, %v1306_v1  ;;  %1190 = vmatpush3.msra.mxu0 %v837_v23 }
0x1031   :  { %1191 = vmatprep.subr.mxu0 %v1306_v1 }
0x1032   :  { %1192 = vmatpush3.msra.mxu0 %v836_v24 }
0x1033   :  { %1193 = vmatprep.subr.mxu0 %v1306_v1 }
0x1034   :  { %1194 = vmatpush3.msra.mxu0 %v835_v25 }
0x1035   :  { %1195 = vmatprep.subr.mxu0 %v1306_v1 }
0x1036   :  { %1196 = vmatpush3.msra.mxu0 %v834_v26 }
0x10ef   :  { %v705_v51 = vpop.f32.mrf.mxu0 }
0x10f0   :  { %v706_v52 = vadd.f32 %v1042_v50, %v705_v51 }
0x10f1   :  { %v1177_v53 = vpop.f32.mrf.mxu0 }
0x10f2   :  { %1264 = vtanh.f32 %v706_v52  ;;  %v1044_v55 = vmul.f32 -1.442695, %v706_v52 }
0x10f4   :  { %1266 = vpow2.f32 %v1044_v55 }
0x10ff   :  { %v1265_v54 = vpop.eup %1264 }
0x1100   :  { %718 = vrot.lane.b32.xlu0 %v1265_v54, %s1308_s30 }
0x1101   :  { %v1267_v56 = vpop.eup %1266 }
0x1102   :  { %v712_v57 = vadd.f32 1.0, %v1267_v56 }
0x1104   :  { %1268 = vrcp.f32 %v712_v57 }
0x1111   :  { %v1269_v58 = vpop.eup %1268 }
0x1112   :  { %v716_v61 = vmul.f32 %v1269_v58, %v625_v45 }
0x1172   :  { %v719_v59 = vpop.permute.xlu0 %718 }
0x1173   :  { %v721_v60 = vmul.f32 %v1269_v58, %v719_v59 }
0x1175   :  { %723 = vrot.lane.b32.xlu1 %v721_v60, %s1309_s7 }
0x11e7   :  { %v724_v62 = vpop.permute.xlu1 %723 }
0x11e8   :  { %v726_v63 = vadd.f32 %v724_v62, %v716_v61 }
0x11ea   :  { %1270 = vtanh.f32 %v726_v63 }
0x11f7   :  { %v1271_v5 = vpop.eup %1270 }
0x11f8   :  { %729 = vrot.lane.b32.xlu0 %v1271_v5, %s1308_s30 }
0x126a   :  { %v730_v6 = vpop.permute.xlu0 %729 }
0x126b   :  { %v732_v7 = vmul.f32 %v1269_v58, %v730_v6 }
0x126d   :  { %736 = vrot.lane.b32.xlu1 %v732_v7, %s1309_s7 }
0x12df   :  { %v737_v8 = vpop.permute.xlu1 %736 }
0x12e0   :  { %1187 = vmatmul.mubr.msk.f32.vlgmr.msra.gmra.mxu1 %vm29_vm1, %v737_v8 }
0x12e1   :  { %1208 = vmatprep.mubr.msk.f32.mxu1 %vm1307_vm0, %v1306_v1  ;;  %1201 = vmatpush3.msra.mxu1 %v918_v28 }
0x12e2   :  { %1202 = vmatprep.subr.mxu1 %v1306_v1 }
0x12e3   :  { %1203 = vmatpush3.msra.mxu1 %v917_v32 }
0x12e4   :  { %1204 = vmatprep.subr.mxu1 %v1306_v1 }
0x12e5   :  { %1205 = vmatpush3.msra.mxu1 %v916_v33 }
0x12e6   :  { %1206 = vmatprep.subr.mxu1 %v1306_v1 }
0x12e7   :  { %1207 = vmatpush3.msra.mxu1 %v915_v34 }
0x13a0   :  { %v806_v10 = vpop.f32.mrf.mxu1 }
0x13a1   :  { %v807_v11 = vadd.f32 %v1045_v9, %v806_v10 }
0x13a2   :  { %v1188_v12 = vpop.f32.mrf.mxu1 }
0x13a3   :  { %1272 = vtanh.f32 %v807_v11  ;;  %v1047_v14 = vmul.f32 -1.442695, %v807_v11 }
0x13a5   :  { %1274 = vpow2.f32 %v1047_v14 }
0x13b0   :  { %v1273_v13 = vpop.eup %1272 }
0x13b1   :  { %819 = vrot.lane.b32.xlu0 %v1273_v13, %s1308_s30 }
0x13b2   :  { %v1275_v15 = vpop.eup %1274 }
0x13b3   :  { %v813_v16 = vadd.f32 1.0, %v1275_v15 }
0x13b5   :  { %1276 = vrcp.f32 %v813_v16 }
0x13c2   :  { %v1277_v17 = vpop.eup %1276 }
0x13c3   :  { %v817_v20 = vmul.f32 %v1277_v17, %v726_v63 }
0x1423   :  { %v820_v18 = vpop.permute.xlu0 %819 }
0x1424   :  { %v822_v19 = vmul.f32 %v1277_v17, %v820_v18 }
0x1426   :  { %824 = vrot.lane.b32.xlu1 %v822_v19, %s1309_s7 }
0x1498   :  { %v825_v21 = vpop.permute.xlu1 %824 }
0x1499   :  { %v827_v22 = vadd.f32 %v825_v21, %v817_v20 }
0x149b   :  { %1278 = vtanh.f32 %v827_v22 }
0x14a8   :  { %v1279_v27 = vpop.eup %1278 }
0x14a9   :  { %830 = vrot.lane.b32.xlu0 %v1279_v27, %s1308_s30 }
0x151b   :  { %v831_v29 = vpop.permute.xlu0 %830 }
0x151c   :  { %v833_v30 = vmul.f32 %v1277_v17, %v831_v29 }
0x151e   :  { %840 = vrot.lane.b32.xlu1 %v833_v30, %s1309_s7 }
0x1590   :  { %v841_v31 = vpop.permute.xlu1 %840 }
0x1591   :  { %1198 = vmatmul.mubr.msk.f32.vlgmr.msra.gmra.mxu0 %vm29_vm1, %v841_v31 }
0x1651   :  { %v910_v0 = vpop.f32.mrf.mxu0 }
0x1652   :  { %v911_v36 = vadd.f32 %v910_v0, %v838_v35 }
0x1653   :  { %v1199_v37 = vpop.f32.mrf.mxu0 }
0x1654   :  { %v914_v38 = vmax.f32 %v911_v36, 0.0 }
0x1656   :  { %1209 = vmatmul.mubr.msk.f32.vlgmr.msra.gmra.mxu1 %vm29_vm1, %v914_v38 }
0x1716   :  { %v995_v1 = vpop.f32.mrf.mxu1 }
0x1717   :  { %v996_v2 = vadd.f32 %v1049_v39, %v995_v1 }
0x1718   :  { %v1210_v3 = vpop.f32.mrf.mxu1 }
0x1719   :  { %v1000_v40 = vsel %vm999_vm2, %v996_v2, -inf }
0x171a   :  { %1001 = vmax.xlane.f32.xlu0 %v1000_v40 }
0x17a3   :  { %v1002_v41 = vpop.xlane.xlu0 %1001 }
0x17a4   :  { %v1003_v4 = vsub.f32 %v996_v2, %v1002_v41 }
0x17a6   :  { %v1004_v42 = vmul.f32 1.442695, %v1003_v4 }
0x17a8   :  { %1280 = vpow2.f32 %v1004_v42 }
0x17b5   :  { %v1281_v43 = vpop.eup %1280 }
0x17b6   :  { %v1006_v44 = vsel %vm999_vm2, %v1281_v43, 0.0 }
0x17b7   :  { %1007 = vadd.xlane.f32.xlu1 %v1006_v44 }
0x1840   :  { %v1008_v45 = vpop.xlane.xlu1 %1007 }
0x1841   :  { %1282 = vrcp.f32 %v1008_v45 }
0x184e   :  { %v1283_v46 = vpop.eup %1282 }
0x184f   :  { %v1010_v47 = vmul.f32 %v1283_v46, %v1281_v43 }
0x1851   :  { %1011 = vst [vmem:[#allocation2] sm:$0x3] %v1010_v47 }
0x1852   :  { %1295 = shalt.err (!%p1292_p4)
}
0x1853   :  { %1021 = dma.vmem_to_hbm [thread:$0]  %s1019_s4, 32, %s1563_s6, [#allocation3]  }
0x1854   :  { %1304 = dma.done.wait [#allocation3], 32  }
0x1855   :  { %1305 = vsyncadd [#allocation3], 4294967264 }
0x1856   :  { %1025 = vsyncpa [#allocation3], 1 }

</bundles_post_ra>
